<compile_context>
chip_gen: v6e
topology: v6e:2x2x1
jax: 0.10.0
libtpu: 0.0.40
codegen_flags: <defaults>
</compile_context>

<pallas_src>
from functools import partial

import numpy as np
import jax
import jax.numpy as jnp
from jax.experimental import pallas as pl
from jax.experimental.pallas import tpu as pltpu


def _bottleneck_kernel(x_ref, w1_ref, b1_ref, w2_ref, b2_ref, w3_ref, b3_ref,
                       masks_ref, out_ref, *, W):
    # x_ref block: (1, Cin, L) with L = nb*H*W  (channels in sublanes, space in lanes).
    L = x_ref.shape[2]
    x = x_ref[0]                                              # (Cin, L) f32

    # ---- conv1 (1x1, BN folded) + bias + relu :  (P,Cin) @ (Cin,L) ----
    h1 = jnp.dot(w1_ref[...], x.astype(jnp.bfloat16),
                 preferred_element_type=jnp.float32)          # (P, L) f32
    h1 = jnp.maximum(h1 + b1_ref[...], 0.0)

    # ---- conv2 (3x3, pad=1): 9 lane-rolled taps, border-masked, 9 MXU dots ----
    h2 = None
    for dy in range(3):
        for dx in range(3):
            tap = dy * 3 + dx
            off = (dy - 1) * W + (dx - 1)        # lane offset of this tap
            shift = (-off) % L                   # roll so lane p sees h1[p + off]
            v = h1 if shift == 0 else pltpu.roll(h1, shift, 1)
            if tap != 4:                         # center tap never crosses the border
                v = v * masks_ref[tap]           # (P,L) * (1,L): zero-pad at edges
            d = jnp.dot(w2_ref[tap], v.astype(jnp.bfloat16),
                        preferred_element_type=jnp.float32)   # (P, L) f32
            h2 = d if h2 is None else h2 + d
    h2 = jnp.maximum(h2 + b2_ref[...], 0.0)

    # ---- conv3 (1x1, BN folded) + bias + residual + relu ----
    h3 = jnp.dot(w3_ref[...], h2.astype(jnp.bfloat16),
                 preferred_element_type=jnp.float32)          # (Cin, L)
    h3 = jnp.maximum(h3 + b3_ref[...] + x, 0.0)               # residual in f32
    out_ref[0] = h3.astype(out_ref.dtype)                     # full-lane store


def _make_tap_masks(H, W, nb):
    """1.0 where the 3x3 tap reads inside the image, 0.0 at the zero-pad border."""
    y = np.arange(H)[:, None]
    x = np.arange(W)[None, :]
    masks = []
    for dy in range(3):
        for dx in range(3):
            ok = np.ones((H, W), np.float32)
            if dy == 0:
                ok = ok * (y >= 1)
            elif dy == 2:
                ok = ok * (y <= H - 2)
            if dx == 0:
                ok = ok * (x >= 1)
            elif dx == 2:
                ok = ok * (x <= W - 2)
            masks.append(np.tile(ok.reshape(-1), nb))
    return jnp.asarray(np.stack(masks).reshape(9, 1, nb * H * W), jnp.float32)


def bottleneck_pallas(x_nchw, params, *, grid_steps=None):
    """x_nchw: (N, Cin, H, W) with Cin == 4*planes; params from fold_params()."""
    N, Cin, H, W = x_nchw.shape
    P = params["w1"].shape[0]
    assert Cin == 4 * P, "residual add requires inplanes == 4 * planes"
    HW = H * W

    if grid_steps is None:
        # 2 parallel chunks -> one per v7x TensorCore.  On single-TC v5e/v6e,
        # pass grid_steps=1 to fold the whole batch into one grid step.
        grid_steps = min(N, 2)
    assert N % grid_steps == 0
    nb = N // grid_steps
    L = nb * HW                                  # lanes per grid step

    # Pack each chunk of nb images as one channels-first (Cin, nb*HW) slab.
    x3 = (x_nchw.reshape(grid_steps, nb, Cin, HW)
          .transpose(0, 2, 1, 3)
          .reshape(grid_steps, Cin, L))
    masks = _make_tap_masks(H, W, nb)            # (9, 1, L) f32

    kernel = partial(_bottleneck_kernel, W=W)

    out = pl.pallas_call(
        kernel,
        out_shape=jax.ShapeDtypeStruct((grid_steps, Cin, L), x_nchw.dtype),
        grid=(grid_steps,),
        in_specs=[
            pl.BlockSpec((1, Cin, L), lambda n: (n, 0, 0)),    # x (one chunk)
            pl.BlockSpec((P, Cin), lambda n: (0, 0)),          # w1 * bn1.scale (bf16)
            pl.BlockSpec((P, 1), lambda n: (0, 0)),            # bn1 bias (f32)
            pl.BlockSpec((9, P, P), lambda n: (0, 0, 0)),      # per-tap w2 * bn2.scale
            pl.BlockSpec((P, 1), lambda n: (0, 0)),            # bn2 bias
            pl.BlockSpec((Cin, P), lambda n: (0, 0)),          # w3 * bn3.scale
            pl.BlockSpec((Cin, 1), lambda n: (0, 0)),          # bn3 bias
            pl.BlockSpec((9, 1, L), lambda n: (0, 0, 0)),      # border masks
        ],
        out_specs=pl.BlockSpec((1, Cin, L), lambda n: (n, 0, 0)),
        # At production image sizes: tile H across the grid with a 1-row halo
        # and raise vmem_limit_bytes here (scoped default: 16 MiB v5e, 32 MiB v6e/v7x).
        compiler_params=pltpu.CompilerParams(
            dimension_semantics=("parallel",)),
    )(x3, params["w1"], params["b1"], params["w2"], params["b2"],
      params["w3"], params["b3"], masks)

    return (out.reshape(grid_steps, Cin, nb, HW)
            .transpose(0, 2, 1, 3)
            .reshape(N, Cin, H, W))


# ----------------------------- parameter handling -----------------------------

def make_raw_params(key, inplanes, planes):
    """Deterministic synthetic weights/BN stats in PyTorch layouts."""
    P, Cin = planes, inplanes
    k1, k2, k3 = jax.random.split(key, 3)
    w1 = jax.random.normal(k1, (P, Cin, 1, 1), jnp.float32) * 0.1       # conv1 OIHW
    w2 = jax.random.normal(k2, (P, P, 3, 3), jnp.float32) * 0.1         # conv2 OIHW
    w3 = jax.random.normal(k3, (4 * P, P, 1, 1), jnp.float32) * 0.1     # conv3 OIHW

    def bn(c, off):
        gamma = 1.0 + 0.05 * jnp.arange(c, dtype=jnp.float32)
        beta = 0.01 * jnp.arange(c, dtype=jnp.float32) - 0.02 * off
        mean = 0.02 * jnp.arange(c, dtype=jnp.float32) * ((-1.0) ** off)
        var = 1.0 + 0.03 * jnp.arange(c, dtype=jnp.float32)
        return gamma, beta, mean, var

    return dict(w1=w1, w2=w2, w3=w3, bn1=bn(P, 0), bn2=bn(P, 1), bn3=bn(4 * P, 2))


def fold_params(raw, eps=1e-5, weight_dtype=jnp.bfloat16):
    """Fold eval-mode BatchNorm into conv weights (scale) + bias and convert
    torch OIHW layouts into the channels-first matmul layouts of the kernel."""
    # TODO(synk): training-mode BatchNorm (batch statistics / running-stat update)
    # is not implemented; this is the eval-mode forward.
    def fold(gamma, beta, mean, var):
        s = gamma / jnp.sqrt(var + eps)
        return s, beta - mean * s

    s1, b1 = fold(*raw["bn1"])
    s2, b2 = fold(*raw["bn2"])
    s3, b3 = fold(*raw["bn3"])
    P = raw["w1"].shape[0]
    Cin = raw["w1"].shape[1]

    w1 = raw["w1"][:, :, 0, 0] * s1[:, None]                            # (P, Cin)
    # (Cout, Cin, ky, kx) -> (ky*kx, Cout, Cin); tap index = ky*3 + kx.
    w2 = jnp.transpose(raw["w2"], (2, 3, 0, 1)).reshape(9, P, P) * s2[None, :, None]
    w3 = raw["w3"][:, :, 0, 0] * s3[:, None]                            # (4P, P)

    return dict(
        w1=w1.astype(weight_dtype), b1=b1.reshape(P, 1).astype(jnp.float32),
        w2=w2.astype(weight_dtype), b2=b2.reshape(P, 1).astype(jnp.float32),
        w3=w3.astype(weight_dtype), b3=b3.reshape(4 * P, 1).astype(jnp.float32),
    )


def bottleneck_ref(x_nchw, p):
    """Pure-JAX reference (same eval-mode math, f32 activations), NCHW."""
    N, Cin, H, W = x_nchw.shape
    P = p["w1"].shape[0]
    w1 = p["w1"].astype(jnp.float32)
    w2 = p["w2"].astype(jnp.float32)
    w3 = p["w3"].astype(jnp.float32)

    h = jnp.einsum("oc,nchw->nohw", w1, x_nchw) + p["b1"].reshape(1, P, 1, 1)
    h = jnp.maximum(h, 0.0)
    hp = jnp.pad(h, ((0, 0), (0, 0), (1, 1), (1, 1)))
    acc = jnp.zeros((N, P, H, W), jnp.float32)
    for dy in range(3):
        for dx in range(3):
            acc = acc + jnp.einsum("oc,nchw->nohw", w2[dy * 3 + dx],
                                   hp[:, :, dy:dy + H, dx:dx + W])
    h2 = jnp.maximum(acc + p["b2"].reshape(1, P, 1, 1), 0.0)
    h3 = jnp.einsum("oc,nchw->nohw", w3, h2) + p["b3"].reshape(1, Cin, 1, 1) + x_nchw
    return jnp.maximum(h3, 0.0)


if __name__ == "__main__":
    N, inplanes, H, W = 2, 32, 16, 16
    planes = inplanes // 4  # expansion = 4 -> inplanes must equal planes * 4

    key = jax.random.PRNGKey(0)
    k_x, k_w = jax.random.split(key)

    # PyTorch-style NCHW input.
    x = jax.random.normal(k_x, (N, inplanes, H, W), jnp.float32)

    raw = make_raw_params(k_w, inplanes, planes)
    params = fold_params(raw)

    out = jax.block_until_ready(bottleneck_pallas(x, params))
    ref = bottleneck_ref(x, params)

    assert out.shape == (N, inplanes, H, W)
    np.testing.assert_allclose(np.asarray(out), np.asarray(ref),
                               rtol=2e-2, atol=2e-2)
    print("KERNEL_OK")
</pallas_src>

<mosaic_0001>
module attributes {stable_mosaic.version = 11 : i64} {
  func.func @_bottleneck_kernel(%arg0: i32, %arg1: memref<1x32x256xf32, #tpu.memory_space<vmem>>, %arg2: memref<8x32xbf16, #tpu.memory_space<vmem>>, %arg3: memref<8x1xf32, #tpu.memory_space<vmem>>, %arg4: memref<9x8x8xbf16, #tpu.memory_space<vmem>>, %arg5: memref<8x1xf32, #tpu.memory_space<vmem>>, %arg6: memref<32x8xbf16, #tpu.memory_space<vmem>>, %arg7: memref<32x1xf32, #tpu.memory_space<vmem>>, %arg8: memref<9x1x256xf32, #tpu.memory_space<vmem>>, %arg9: memref<1x32x256xf32, #tpu.memory_space<vmem>>) attributes {dimension_semantics = [#tpu.dimension_semantics<parallel>], iteration_bounds = array<i64: 2>, scalar_prefetch = 0 : i64, scratch_operands = 0 : i64, tpu.core_type = #tpu.core_type<tc>, window_params = [{transform_indices = @transform_0, window_bounds = array<i64: 1, 32, 256>}, {pipeline_mode = #tpu.pipeline_mode<synchronous>, transform_indices = @transform_1, window_bounds = array<i64: 8, 32>}, {pipeline_mode = #tpu.pipeline_mode<synchronous>, transform_indices = @transform_2, window_bounds = array<i64: 8, 1>}, {pipeline_mode = #tpu.pipeline_mode<synchronous>, transform_indices = @transform_3, window_bounds = array<i64: 9, 8, 8>}, {pipeline_mode = #tpu.pipeline_mode<synchronous>, transform_indices = @transform_4, window_bounds = array<i64: 8, 1>}, {pipeline_mode = #tpu.pipeline_mode<synchronous>, transform_indices = @transform_5, window_bounds = array<i64: 32, 8>}, {pipeline_mode = #tpu.pipeline_mode<synchronous>, transform_indices = @transform_6, window_bounds = array<i64: 32, 1>}, {pipeline_mode = #tpu.pipeline_mode<synchronous>, transform_indices = @transform_7, window_bounds = array<i64: 9, 1, 256>}, {transform_indices = @transform_8, window_bounds = array<i64: 1, 32, 256>}]} {
    %c0 = arith.constant 0 : index
    %c0_0 = arith.constant 0 : index
    %c0_1 = arith.constant 0 : index
    %0 = vector.load %arg1[%c0, %c0_0, %c0_1] : memref<1x32x256xf32, #tpu.memory_space<vmem>>, vector<1x32x256xf32>
    %1 = vector.shape_cast %0 : vector<1x32x256xf32> to vector<32x256xf32>
    %c0_2 = arith.constant 0 : index
    %c0_3 = arith.constant 0 : index
    %2 = vector.load %arg2[%c0_2, %c0_3] : memref<8x32xbf16, #tpu.memory_space<vmem>>, vector<8x32xbf16>
    %3 = arith.truncf %1 : vector<32x256xf32> to vector<32x256xbf16>
    %cst = arith.constant dense<0.000000e+00> : vector<8x256xf32>
    %4 = tpu.matmul %2, %3, %cst {dimension_numbers = #tpu.dot_dimension_numbers<[1], [0], [0], [1], [0, 0, 1, 1], [], []>} : vector<8x32xbf16>, vector<32x256xbf16>, vector<8x256xf32> -> vector<8x256xf32>
    %c0_4 = arith.constant 0 : index
    %c0_5 = arith.constant 0 : index
    %5 = vector.load %arg3[%c0_4, %c0_5] : memref<8x1xf32, #tpu.memory_space<vmem>>, vector<8x1xf32>
    %6 = vector.broadcast %5 : vector<8x1xf32> to vector<8x256xf32>
    %7 = arith.addf %4, %6 : vector<8x256xf32>
    %cst_6 = arith.constant 0.000000e+00 : f32
    %8 = vector.broadcast %cst_6 : f32 to vector<8x256xf32>
    %9 = arith.maximumf %7, %8 : vector<8x256xf32>
    %c17_i32 = arith.constant 17 : i32
    %10 = tpu.dynamic_rotate %9 by %c17_i32 dim 1 : vector<8x256xf32>, i32 -> vector<8x256xf32>
    %c0_7 = arith.constant 0 : index
    %c0_8 = arith.constant 0 : index
    %c0_9 = arith.constant 0 : index
    %11 = vector.load %arg8[%c0_7, %c0_8, %c0_9] : memref<9x1x256xf32, #tpu.memory_space<vmem>>, vector<1x1x256xf32>
    %12 = vector.shape_cast %11 : vector<1x1x256xf32> to vector<1x256xf32>
    %13 = vector.broadcast %12 : vector<1x256xf32> to vector<8x256xf32>
    %14 = arith.mulf %10, %13 : vector<8x256xf32>
    %c0_10 = arith.constant 0 : index
    %c0_11 = arith.constant 0 : index
    %c0_12 = arith.constant 0 : index
    %15 = vector.load %arg4[%c0_10, %c0_11, %c0_12] : memref<9x8x8xbf16, #tpu.memory_space<vmem>>, vector<1x8x8xbf16>
    %16 = vector.shape_cast %15 : vector<1x8x8xbf16> to vector<8x8xbf16>
    %17 = arith.truncf %14 : vector<8x256xf32> to vector<8x256xbf16>
    %cst_13 = arith.constant dense<0.000000e+00> : vector<8x256xf32>
    %18 = tpu.matmul %16, %17, %cst_13 {dimension_numbers = #tpu.dot_dimension_numbers<[1], [0], [0], [1], [0, 0, 1, 1], [], []>} : vector<8x8xbf16>, vector<8x256xbf16>, vector<8x256xf32> -> vector<8x256xf32>
    %c16_i32 = arith.constant 16 : i32
    %19 = tpu.dynamic_rotate %9 by %c16_i32 dim 1 : vector<8x256xf32>, i32 -> vector<8x256xf32>
    %c1 = arith.constant 1 : index
    %c0_14 = arith.constant 0 : index
    %c0_15 = arith.constant 0 : index
    %20 = vector.load %arg8[%c1, %c0_14, %c0_15] : memref<9x1x256xf32, #tpu.memory_space<vmem>>, vector<1x1x256xf32>
    %21 = vector.shape_cast %20 : vector<1x1x256xf32> to vector<1x256xf32>
    %22 = vector.broadcast %21 : vector<1x256xf32> to vector<8x256xf32>
    %23 = arith.mulf %19, %22 : vector<8x256xf32>
    %c1_16 = arith.constant 1 : index
    %c0_17 = arith.constant 0 : index
    %c0_18 = arith.constant 0 : index
    %24 = vector.load %arg4[%c1_16, %c0_17, %c0_18] : memref<9x8x8xbf16, #tpu.memory_space<vmem>>, vector<1x8x8xbf16>
    %25 = vector.shape_cast %24 : vector<1x8x8xbf16> to vector<8x8xbf16>
    %26 = arith.truncf %23 : vector<8x256xf32> to vector<8x256xbf16>
    %cst_19 = arith.constant dense<0.000000e+00> : vector<8x256xf32>
    %27 = tpu.matmul %25, %26, %cst_19 {dimension_numbers = #tpu.dot_dimension_numbers<[1], [0], [0], [1], [0, 0, 1, 1], [], []>} : vector<8x8xbf16>, vector<8x256xbf16>, vector<8x256xf32> -> vector<8x256xf32>
    %28 = arith.addf %18, %27 : vector<8x256xf32>
    %c15_i32 = arith.constant 15 : i32
    %29 = tpu.dynamic_rotate %9 by %c15_i32 dim 1 : vector<8x256xf32>, i32 -> vector<8x256xf32>
    %c2 = arith.constant 2 : index
    %c0_20 = arith.constant 0 : index
    %c0_21 = arith.constant 0 : index
    %30 = vector.load %arg8[%c2, %c0_20, %c0_21] : memref<9x1x256xf32, #tpu.memory_space<vmem>>, vector<1x1x256xf32>
    %31 = vector.shape_cast %30 : vector<1x1x256xf32> to vector<1x256xf32>
    %32 = vector.broadcast %31 : vector<1x256xf32> to vector<8x256xf32>
    %33 = arith.mulf %29, %32 : vector<8x256xf32>
    %c2_22 = arith.constant 2 : index
    %c0_23 = arith.constant 0 : index
    %c0_24 = arith.constant 0 : index
    %34 = vector.load %arg4[%c2_22, %c0_23, %c0_24] : memref<9x8x8xbf16, #tpu.memory_space<vmem>>, vector<1x8x8xbf16>
    %35 = vector.shape_cast %34 : vector<1x8x8xbf16> to vector<8x8xbf16>
    %36 = arith.truncf %33 : vector<8x256xf32> to vector<8x256xbf16>
    %cst_25 = arith.constant dense<0.000000e+00> : vector<8x256xf32>
    %37 = tpu.matmul %35, %36, %cst_25 {dimension_numbers = #tpu.dot_dimension_numbers<[1], [0], [0], [1], [0, 0, 1, 1], [], []>} : vector<8x8xbf16>, vector<8x256xbf16>, vector<8x256xf32> -> vector<8x256xf32>
    %38 = arith.addf %28, %37 : vector<8x256xf32>
    %c1_i32 = arith.constant 1 : i32
    %39 = tpu.dynamic_rotate %9 by %c1_i32 dim 1 : vector<8x256xf32>, i32 -> vector<8x256xf32>
    %c3 = arith.constant 3 : index
    %c0_26 = arith.constant 0 : index
    %c0_27 = arith.constant 0 : index
    %40 = vector.load %arg8[%c3, %c0_26, %c0_27] : memref<9x1x256xf32, #tpu.memory_space<vmem>>, vector<1x1x256xf32>
    %41 = vector.shape_cast %40 : vector<1x1x256xf32> to vector<1x256xf32>
    %42 = vector.broadcast %41 : vector<1x256xf32> to vector<8x256xf32>
    %43 = arith.mulf %39, %42 : vector<8x256xf32>
    %c3_28 = arith.constant 3 : index
    %c0_29 = arith.constant 0 : index
    %c0_30 = arith.constant 0 : index
    %44 = vector.load %arg4[%c3_28, %c0_29, %c0_30] : memref<9x8x8xbf16, #tpu.memory_space<vmem>>, vector<1x8x8xbf16>
    %45 = vector.shape_cast %44 : vector<1x8x8xbf16> to vector<8x8xbf16>
    %46 = arith.truncf %43 : vector<8x256xf32> to vector<8x256xbf16>
    %cst_31 = arith.constant dense<0.000000e+00> : vector<8x256xf32>
    %47 = tpu.matmul %45, %46, %cst_31 {dimension_numbers = #tpu.dot_dimension_numbers<[1], [0], [0], [1], [0, 0, 1, 1], [], []>} : vector<8x8xbf16>, vector<8x256xbf16>, vector<8x256xf32> -> vector<8x256xf32>
    %48 = arith.addf %38, %47 : vector<8x256xf32>
    %c4 = arith.constant 4 : index
    %c0_32 = arith.constant 0 : index
    %c0_33 = arith.constant 0 : index
    %49 = vector.load %arg4[%c4, %c0_32, %c0_33] : memref<9x8x8xbf16, #tpu.memory_space<vmem>>, vector<1x8x8xbf16>
    %50 = vector.shape_cast %49 : vector<1x8x8xbf16> to vector<8x8xbf16>
    %51 = arith.truncf %9 : vector<8x256xf32> to vector<8x256xbf16>
    %cst_34 = arith.constant dense<0.000000e+00> : vector<8x256xf32>
    %52 = tpu.matmul %50, %51, %cst_34 {dimension_numbers = #tpu.dot_dimension_numbers<[1], [0], [0], [1], [0, 0, 1, 1], [], []>} : vector<8x8xbf16>, vector<8x256xbf16>, vector<8x256xf32> -> vector<8x256xf32>
    %53 = arith.addf %48, %52 : vector<8x256xf32>
    %c255_i32 = arith.constant 255 : i32
    %54 = tpu.dynamic_rotate %9 by %c255_i32 dim 1 : vector<8x256xf32>, i32 -> vector<8x256xf32>
    %c5 = arith.constant 5 : index
    %c0_35 = arith.constant 0 : index
    %c0_36 = arith.constant 0 : index
    %55 = vector.load %arg8[%c5, %c0_35, %c0_36] : memref<9x1x256xf32, #tpu.memory_space<vmem>>, vector<1x1x256xf32>
    %56 = vector.shape_cast %55 : vector<1x1x256xf32> to vector<1x256xf32>
    %57 = vector.broadcast %56 : vector<1x256xf32> to vector<8x256xf32>
    %58 = arith.mulf %54, %57 : vector<8x256xf32>
    %c5_37 = arith.constant 5 : index
    %c0_38 = arith.constant 0 : index
    %c0_39 = arith.constant 0 : index
    %59 = vector.load %arg4[%c5_37, %c0_38, %c0_39] : memref<9x8x8xbf16, #tpu.memory_space<vmem>>, vector<1x8x8xbf16>
    %60 = vector.shape_cast %59 : vector<1x8x8xbf16> to vector<8x8xbf16>
    %61 = arith.truncf %58 : vector<8x256xf32> to vector<8x256xbf16>
    %cst_40 = arith.constant dense<0.000000e+00> : vector<8x256xf32>
    %62 = tpu.matmul %60, %61, %cst_40 {dimension_numbers = #tpu.dot_dimension_numbers<[1], [0], [0], [1], [0, 0, 1, 1], [], []>} : vector<8x8xbf16>, vector<8x256xbf16>, vector<8x256xf32> -> vector<8x256xf32>
    %63 = arith.addf %53, %62 : vector<8x256xf32>
    %c241_i32 = arith.constant 241 : i32
    %64 = tpu.dynamic_rotate %9 by %c241_i32 dim 1 : vector<8x256xf32>, i32 -> vector<8x256xf32>
    %c6 = arith.constant 6 : index
    %c0_41 = arith.constant 0 : index
    %c0_42 = arith.constant 0 : index
    %65 = vector.load %arg8[%c6, %c0_41, %c0_42] : memref<9x1x256xf32, #tpu.memory_space<vmem>>, vector<1x1x256xf32>
    %66 = vector.shape_cast %65 : vector<1x1x256xf32> to vector<1x256xf32>
    %67 = vector.broadcast %66 : vector<1x256xf32> to vector<8x256xf32>
    %68 = arith.mulf %64, %67 : vector<8x256xf32>
    %c6_43 = arith.constant 6 : index
    %c0_44 = arith.constant 0 : index
    %c0_45 = arith.constant 0 : index
    %69 = vector.load %arg4[%c6_43, %c0_44, %c0_45] : memref<9x8x8xbf16, #tpu.memory_space<vmem>>, vector<1x8x8xbf16>
    %70 = vector.shape_cast %69 : vector<1x8x8xbf16> to vector<8x8xbf16>
    %71 = arith.truncf %68 : vector<8x256xf32> to vector<8x256xbf16>
    %cst_46 = arith.constant dense<0.000000e+00> : vector<8x256xf32>
    %72 = tpu.matmul %70, %71, %cst_46 {dimension_numbers = #tpu.dot_dimension_numbers<[1], [0], [0], [1], [0, 0, 1, 1], [], []>} : vector<8x8xbf16>, vector<8x256xbf16>, vector<8x256xf32> -> vector<8x256xf32>
    %73 = arith.addf %63, %72 : vector<8x256xf32>
    %c240_i32 = arith.constant 240 : i32
    %74 = tpu.dynamic_rotate %9 by %c240_i32 dim 1 : vector<8x256xf32>, i32 -> vector<8x256xf32>
    %c7 = arith.constant 7 : index
    %c0_47 = arith.constant 0 : index
    %c0_48 = arith.constant 0 : index
    %75 = vector.load %arg8[%c7, %c0_47, %c0_48] : memref<9x1x256xf32, #tpu.memory_space<vmem>>, vector<1x1x256xf32>
    %76 = vector.shape_cast %75 : vector<1x1x256xf32> to vector<1x256xf32>
    %77 = vector.broadcast %76 : vector<1x256xf32> to vector<8x256xf32>
    %78 = arith.mulf %74, %77 : vector<8x256xf32>
    %c7_49 = arith.constant 7 : index
    %c0_50 = arith.constant 0 : index
    %c0_51 = arith.constant 0 : index
    %79 = vector.load %arg4[%c7_49, %c0_50, %c0_51] : memref<9x8x8xbf16, #tpu.memory_space<vmem>>, vector<1x8x8xbf16>
    %80 = vector.shape_cast %79 : vector<1x8x8xbf16> to vector<8x8xbf16>
    %81 = arith.truncf %78 : vector<8x256xf32> to vector<8x256xbf16>
    %cst_52 = arith.constant dense<0.000000e+00> : vector<8x256xf32>
    %82 = tpu.matmul %80, %81, %cst_52 {dimension_numbers = #tpu.dot_dimension_numbers<[1], [0], [0], [1], [0, 0, 1, 1], [], []>} : vector<8x8xbf16>, vector<8x256xbf16>, vector<8x256xf32> -> vector<8x256xf32>
    %83 = arith.addf %73, %82 : vector<8x256xf32>
    %c239_i32 = arith.constant 239 : i32
    %84 = tpu.dynamic_rotate %9 by %c239_i32 dim 1 : vector<8x256xf32>, i32 -> vector<8x256xf32>
    %c8 = arith.constant 8 : index
    %c0_53 = arith.constant 0 : index
    %c0_54 = arith.constant 0 : index
    %85 = vector.load %arg8[%c8, %c0_53, %c0_54] : memref<9x1x256xf32, #tpu.memory_space<vmem>>, vector<1x1x256xf32>
    %86 = vector.shape_cast %85 : vector<1x1x256xf32> to vector<1x256xf32>
    %87 = vector.broadcast %86 : vector<1x256xf32> to vector<8x256xf32>
    %88 = arith.mulf %84, %87 : vector<8x256xf32>
    %c8_55 = arith.constant 8 : index
    %c0_56 = arith.constant 0 : index
    %c0_57 = arith.constant 0 : index
    %89 = vector.load %arg4[%c8_55, %c0_56, %c0_57] : memref<9x8x8xbf16, #tpu.memory_space<vmem>>, vector<1x8x8xbf16>
    %90 = vector.shape_cast %89 : vector<1x8x8xbf16> to vector<8x8xbf16>
    %91 = arith.truncf %88 : vector<8x256xf32> to vector<8x256xbf16>
    %cst_58 = arith.constant dense<0.000000e+00> : vector<8x256xf32>
    %92 = tpu.matmul %90, %91, %cst_58 {dimension_numbers = #tpu.dot_dimension_numbers<[1], [0], [0], [1], [0, 0, 1, 1], [], []>} : vector<8x8xbf16>, vector<8x256xbf16>, vector<8x256xf32> -> vector<8x256xf32>
    %93 = arith.addf %83, %92 : vector<8x256xf32>
    %c0_59 = arith.constant 0 : index
    %c0_60 = arith.constant 0 : index
    %94 = vector.load %arg5[%c0_59, %c0_60] : memref<8x1xf32, #tpu.memory_space<vmem>>, vector<8x1xf32>
    %95 = vector.broadcast %94 : vector<8x1xf32> to vector<8x256xf32>
    %96 = arith.addf %93, %95 : vector<8x256xf32>
    %cst_61 = arith.constant 0.000000e+00 : f32
    %97 = vector.broadcast %cst_61 : f32 to vector<8x256xf32>
    %98 = arith.maximumf %96, %97 : vector<8x256xf32>
    %c0_62 = arith.constant 0 : index
    %c0_63 = arith.constant 0 : index
    %99 = vector.load %arg6[%c0_62, %c0_63] : memref<32x8xbf16, #tpu.memory_space<vmem>>, vector<32x8xbf16>
    %100 = arith.truncf %98 : vector<8x256xf32> to vector<8x256xbf16>
    %cst_64 = arith.constant dense<0.000000e+00> : vector<32x256xf32>
    %101 = tpu.matmul %99, %100, %cst_64 {dimension_numbers = #tpu.dot_dimension_numbers<[1], [0], [0], [1], [0, 0, 1, 1], [], []>} : vector<32x8xbf16>, vector<8x256xbf16>, vector<32x256xf32> -> vector<32x256xf32>
    %c0_65 = arith.constant 0 : index
    %c0_66 = arith.constant 0 : index
    %102 = vector.load %arg7[%c0_65, %c0_66] : memref<32x1xf32, #tpu.memory_space<vmem>>, vector<32x1xf32>
    %103 = vector.broadcast %102 : vector<32x1xf32> to vector<32x256xf32>
    %104 = arith.addf %101, %103 : vector<32x256xf32>
    %105 = arith.addf %104, %1 : vector<32x256xf32>
    %cst_67 = arith.constant 0.000000e+00 : f32
    %106 = vector.broadcast %cst_67 : f32 to vector<32x256xf32>
    %107 = arith.maximumf %105, %106 : vector<32x256xf32>
    %c0_68 = arith.constant 0 : index
    %c0_69 = arith.constant 0 : index
    %c0_70 = arith.constant 0 : index
    %108 = vector.load %arg9[%c0_68, %c0_69, %c0_70] : memref<1x32x256xf32, #tpu.memory_space<vmem>>, vector<1x32x256xf32>
    %109 = vector.shape_cast %108 : vector<1x32x256xf32> to vector<32x256xf32>
    %110 = vector.shape_cast %107 : vector<32x256xf32> to vector<1x32x256xf32>
    tpu.vector_store %arg9[%c0_68, %c0_69, %c0_70], %110 {strides = array<i32>} : memref<1x32x256xf32, #tpu.memory_space<vmem>>, vector<1x32x256xf32>,
    return
  }
  func.func @transform_0(%arg0: i32) -> (i32, i32, i32) {
    %c0_i32 = arith.constant 0 : i32
    %c0_i32_0 = arith.constant 0 : i32
    %c0_i32_1 = arith.constant 0 : i32
    return %arg0, %c0_i32, %c0_i32_0 : i32, i32, i32
  }
  func.func @transform_1(%arg0: i32) -> (i32, i32) {
    %c0_i32 = arith.constant 0 : i32
    %c0_i32_0 = arith.constant 0 : i32
    %c0_i32_1 = arith.constant 0 : i32
    return %c0_i32, %c0_i32_0 : i32, i32
  }
  func.func @transform_2(%arg0: i32) -> (i32, i32) {
    %c0_i32 = arith.constant 0 : i32
    %c0_i32_0 = arith.constant 0 : i32
    %c0_i32_1 = arith.constant 0 : i32
    return %c0_i32, %c0_i32_0 : i32, i32
  }
  func.func @transform_3(%arg0: i32) -> (i32, i32, i32) {
    %c0_i32 = arith.constant 0 : i32
    %c0_i32_0 = arith.constant 0 : i32
    %c0_i32_1 = arith.constant 0 : i32
    %c0_i32_2 = arith.constant 0 : i32
    return %c0_i32, %c0_i32_0, %c0_i32_1 : i32, i32, i32
  }
  func.func @transform_4(%arg0: i32) -> (i32, i32) {
    %c0_i32 = arith.constant 0 : i32
    %c0_i32_0 = arith.constant 0 : i32
    %c0_i32_1 = arith.constant 0 : i32
    return %c0_i32, %c0_i32_0 : i32, i32
  }
  func.func @transform_5(%arg0: i32) -> (i32, i32) {
    %c0_i32 = arith.constant 0 : i32
    %c0_i32_0 = arith.constant 0 : i32
    %c0_i32_1 = arith.constant 0 : i32
    return %c0_i32, %c0_i32_0 : i32, i32
  }
  func.func @transform_6(%arg0: i32) -> (i32, i32) {
    %c0_i32 = arith.constant 0 : i32
    %c0_i32_0 = arith.constant 0 : i32
    %c0_i32_1 = arith.constant 0 : i32
    return %c0_i32, %c0_i32_0 : i32, i32
  }
  func.func @transform_7(%arg0: i32) -> (i32, i32, i32) {
    %c0_i32 = arith.constant 0 : i32
    %c0_i32_0 = arith.constant 0 : i32
    %c0_i32_1 = arith.constant 0 : i32
    %c0_i32_2 = arith.constant 0 : i32
    return %c0_i32, %c0_i32_0, %c0_i32_1 : i32, i32, i32
  }
  func.func @transform_8(%arg0: i32) -> (i32, i32, i32) {
    %c0_i32 = arith.constant 0 : i32
    %c0_i32_0 = arith.constant 0 : i32
    %c0_i32_1 = arith.constant 0 : i32
    return %arg0, %c0_i32, %c0_i32_0 : i32, i32, i32
  }
}

</mosaic_0001>

<bundles_post_ra>
// kernel: tpu_custom_call.1
= control target key start
LH: loop header
LB: loop body
LE: loop exit
PB: predicated region body
PF: predicated region fallthrough
CT: control target
= control target key end

     0   :  { %13 = vsyncpa [#allocation3], 0  ;;  %s1925_s0 = inlined_call_operand.vmem [shape: f32[2,32,256], index: 0, kind: input, shape index: {}]   ;;  %s1926_s1 = inlined_call_operand.hbm [shape: bf16[8,32], index: 1, kind: input, shape index: {}]   ;;  %s1927_s2 = inlined_call_operand.vmem [shape: f32[8,1], index: 2, kind: input, shape index: {}]   ;;  %s1928_s3 = inlined_call_operand.vmem [shape: bf16[9,8,8], index: 3, kind: input, shape index: {}]   ;;  %s1929_s4 = inlined_call_operand.vmem [shape: f32[8,1], index: 4, kind: input, shape index: {}]   ;;  %s1930_s5 = inlined_call_operand.vmem [shape: bf16[32,8], index: 5, kind: input, shape index: {}]   ;;  %s1931_s6 = inlined_call_operand.vmem [shape: f32[32,1], index: 6, kind: input, shape index: {}]   ;;  %s1932_s7 = inlined_call_operand.vmem [shape: f32[9,1,256], index: 7, kind: input, shape index: {}]   ;;  %s1933_s8 = inlined_call_operand.hbm [shape: f32[2,32,256], index: 8, kind: output, shape index: {}]  }
   0x1   :  { %14 = vsyncpa [#allocation4], 0 }
   0x2   :  { %16 = vsyncpa [#allocation4 + $0x1], 0  ;;  %s1557_s27 = smov 0   ;;  %s1559_s28 = smov 0  }
   0x3   :  { %s1561_s29 = smov 0   ;;  %s1563_s30 = smov 0  }
   0x4 LB: > { %s1578_s9 = sadd.s32 4294967295, %s1498_s30   ;;  %s1289_s10 = sadd.s32 4294967294, %s1498_s30   ;;  %s1498_s30 = sphi %s1563_s30, %s1941_s30   ;;  %s1494_s29 = sphi %s1561_s29, %s1940_s29   ;;  %s1490_s28 = sphi %s1559_s28, %s1939_s28   ;;  %s1486_s27 = sphi %s1557_s27, %s1938_s27  }
   0x5   : > { %s1582_s11 = sadd.s32 1, %s1498_s30   ;;  %s202_s12 = sadd.s32 1, %s1494_s29 }
   0x6   : > { %s199_s13 = ssub.s32 %s1498_s30, %s1582_s11  ;;  %p212_p0 = scmp.ne.s32.totalorder %s1494_s29, %s1490_s28 }
   0x7   : > { %p200_p1 = scmp.eq.s32.totalorder %s199_s13, 0  ;;  %p213_p2 = scmp.eq.s32.totalorder %s1578_s9, 1 }
   0x8   : > { %p218_p3 = scmp.ne.s32.totalorder %s1490_s28, %s1486_s27  ;;  %p219_p4 = scmp.eq.s32.totalorder %s1289_s10, 1 }
   0x9   : > { %s1593_s14 = scalar_select %p200_p1, %s1494_s29, %s202_s12  }
   0xa   : > { %p1595_p5 = por %p213_p2, %p212_p0  ;;  %p1599_p6 = por %p219_p4, %p218_p3 }
   0xb   : > { %p1290_p7 = scmp.ge.s32.totalorder %s1498_s30, 1  ;;  %p226_p8 = scmp.lt.s32.totalorder %s1498_s30, 3 }
   0xc   : > { %s1935_s16 = scalar_select %p1599_p6, 1, 0 }
   0xd   : > { %p1358_p9 = scmp.eq.s32.totalorder %s1578_s9, 0  ;;  %p1606_p10 = pnand %p1290_p7, %p226_p8 }
   0xe   : > { %s1500_s18 = smov [#allocation2]  }
   0xf   : > { %s239_s19 = sshll.u32 %s1500_s18, 4  ;;  %p1350_p11 = pneg %p1606_p10  ;;  %s240_s19 = int_to_ptr.vmem [resolvable:$true] %s239_s19 }
  0x10   : > { %s1419_s20 = scalar_lea.vmem %s240_s19, 64  ;;  %p1427_p3 = scmp.lt.s32.totalorder %s240_s19, %s240_s19 }
  0x11   : > { %p1351_p12 = pnand %p1358_p9, %p1350_p11  ;;  %p1420_p0 = scmp.ne.s32.totalorder %s240_s19, %s1419_s20 }
  0x12   : > { %p1428_p4 = scmp.lt.s32.totalorder %s1419_s20, %s1419_s20 }
  0x13   : > { %p1410_p13 = pneg %p1351_p12 }
  0x14   : > { %p1429_p6 = por %p1428_p4, %p1427_p3 }
  0x15   : > { %p1422_p1 = pnand %p1420_p0, %p1410_p13 }
  0x17   : > { %p1423_p2 = pneg %p1422_p1 }
  0x19   : > { %p1430_p7 = pnand %p1429_p6, %p1423_p2 }
  0x1b   : > { %1433 = shalt.err (!%p1430_p7)
}
  0x1c   : > { %1353 = dma.hbm_to_vmem [thread:$0]  (!%p1351_p12), %s1926_s1, 64, %s240_s19, [#allocation3]  }
  0x1d   : > { %278 = sbr.rel (%p1606_p10) target bundleno = 841 (0x349), region = 52 }
  0x22   : > { %1477 = dma.done.wait (%p1358_p9), [#allocation3], 64  }
  0x23   : > { %1479 = vsyncadd (%p1358_p9), [#allocation3], 4294967232  ;;  %p312_p8 = scmp.lt.s32.totalorder %s1578_s9, 1  ;;  %v1501_v0 = vmov 0   ;;  %v331_v12 = vld [vmem:[%s1927_s2] sm:$0xff]  ;;  %vm337_vm0 = vcmask 261120   ;;  %v388_v29 = vlaneseq }
  0x24   : > { %373 = vmatprep.mubr.bf16.mxu0 %v1501_v0  ;;  %1404 = vset.pattern.permute.xlu0 %v1501_v0  ;;  %v326_v14 = vld [vmem:[#allocation2] sm:$0xf]  ;;  %s1502_s17 = smov 16   ;;  %s1503_s18 = smov 17   ;;  %v1080_v26 = vld [vmem:[%s1931_s6 + $0x10] sm:$0xff]  ;;  %v1079_v27 = vld [vmem:[%s1931_s6 + $0x8] sm:$0xff] }
  0x25   : > { %s313_s23 = scalar_select %p312_p8, %s1578_s9, 1  ;;  %529 = vmatprep.mubr.bf16.mxu1 %v1501_v0  ;;  %1405 = vset.pattern.permute.xlu1 %v1501_v0  ;;  %v1078_v24 = vld [vmem:[%s1931_s6] sm:$0xff]  ;;  %v1081_v28 = vld [vmem:[%s1931_s6 + $0x18] sm:$0xff]  ;;  %v396_v30 = vshrl.u32 %v388_v29, 7  ;;  %v1697_v31 = vand.u32 127, %v388_v29  ;;  %vm440_vm3 = vcmask 1043456  }
  0x26   : > { %334 = vperm.xlu0 %1404, %v331_v12   ;;  %s1504_s19 = smov 15   ;;  %s1505_s20 = smov 1   ;;  %v1062_v25 = vld [vmem:[%s1929_s4] sm:$0xff]  ;;  %vm436_vm5 = vcmask 64512  }
  0x27   : > { %s1342_s24 = sshll.u32 %s313_s23, 6  ;;  %s1506_s21 = smov 127   ;;  %v1699_v32 = vsub.s32 0, %v396_v30  ;;  %v1701_v33 = vsub.s32 1, %v396_v30  ;;  %v1299_v34 = vld [vmem:[%s1932_s7 + $0x2] sm:$0x3] }
  0x28   : > { %s316_s10 = scalar_lea.vmem %s1925_s0, %s1342_s24  ;;  %s1507_s22 = smov 113   ;;  %vm414_vm1 = vcmp.lt.s32.totalorder %v1697_v31, 16  ;;  %v393_v38 = vld [vmem:[%s1932_s7] sm:$0x3]  ;;  %vm390_vm2 = vcmp.lt.s32.totalorder %v1697_v31, 17  ;;  %vm542_vm4 = vcmp.lt.s32.totalorder %v1697_v31, 15 }
  0x29   : > { %v1632_v1 = vld [vmem:[%s316_s10 + $0x28] sm:$0xff]  ;;  %v1634_v2 = vld [vmem:[%s316_s10 + $0x38] sm:$0xff]  ;;  %v1636_v3 = vld [vmem:[%s316_s10 + $0x20] sm:$0xff]  ;;  %s1508_s23 = smov 112   ;;  %s1509_s24 = smov 111   ;;  %v423_v36 = vrot.slane %v1299_v34, %v1699_v32  ;;  %v427_v37 = vrot.slane %v1299_v34, %v1701_v33  ;;  %v398_v45 = vrot.slane %v393_v38, %v1699_v32  ;;  %v402_v47 = vrot.slane %v393_v38, %v1701_v33 }
  0x2a   : > { %v330_v4 = vpack.c.bf16 %v1634_v2, %v1632_v1  ;;  %v1640_v5 = vld [vmem:[%s316_s10 + $0x30] sm:$0xff]  ;;  %v1642_v6 = vld [vmem:[%s316_s10 + $0x8] sm:$0xff]  ;;  %v1644_v7 = vld [vmem:[%s316_s10 + $0x18] sm:$0xff]  ;;  %vm620_vm6 = vcmp.lt.s32.totalorder %v1697_v31, 1  ;;  %vm754_vm7 = vcmp.lt.s32.totalorder %v1697_v31, 127  ;;  %vm832_vm8 = vcmp.lt.s32.totalorder %v1697_v31, 113 }
  0x2b   : > { %v329_v8 = vpack.c.bf16 %v1640_v5, %v1636_v3  ;;  %v328_v9 = vpack.c.bf16 %v1644_v7, %v1642_v6  ;;  %v1650_v10 = vld [vmem:[%s316_s10] sm:$0xff]  ;;  %v1652_v11 = vld [vmem:[%s316_s10 + $0x10] sm:$0xff]  ;;  %vm910_vm9 = vcmp.lt.s32.totalorder %v1697_v31, 112  ;;  %vm988_vm10 = vcmp.lt.s32.totalorder %v1697_v31, 111  ;;  %s309_s25 = sand.u32 1, %s1490_s28   ;;  %s1343_s13 = sshll.u32 %s1578_s9, 10 }
  0x2c   : > { %353 = vmatprep.subr.bf16.mxu0 %v330_v4  ;;  %v327_v13 = vpack.c.bf16 %v1652_v11, %v1650_v10  ;;  %v1305_v46 = vld [vmem:[%s1932_s7 + $0x4] sm:$0x3]  ;;  %v1309_v59 = vld [vmem:[%s1932_s7 + $0x6] sm:$0x3]  ;;  %s1295_s26 = sshll.u32 %s309_s25, 6 }
  0x2d   : > { %354 = vmatpush1.bf16.msra.mxu0 %v329_v8  ;;  %v551_v53 = vrot.slane %v1305_v46, %v1699_v32  ;;  %v555_v57 = vrot.slane %v1305_v46, %v1701_v33  ;;  %v1300_v60 = vld [vmem:[%s1928_s3 + $0x4] sm:$0xf]  ;;  %s1857_s10 = scalar_lea.vmem [#allocation5], %s1295_s26 }
  0x2e   : > { %355 = vmatprep.subr.bf16.mxu0 %v328_v9  ;;  %v629_v9 = vrot.slane %v1309_v59, %v1699_v32  ;;  %s1215_s12 = sshll.u32 %s1857_s10, 4  ;;  %s1873_s12 = int_to_ptr.vmem [resolvable:$true] %s1215_s12 }
  0x2f   : > { %s1434_s9 = scalar_lea.vmem %s1873_s12, 1024 }
  0x30   : > { %p1435_p6 = scmp.ne.s32.totalorder %s1873_s12, %s1434_s9 }
  0x31   : > { %356 = vmatpush1.bf16.msra.mxu0 %v327_v13 }
  0x32   : > { %p1436_p9 = pnand %p1435_p6, %p1595_p5 }
  0x34   : > { %1298 = vmatmul.mubr.msk.bf16.vlgmr.msra.gmra.mxu0 %vm337_vm0, %v326_v14  ;;  %p1437_p10 = pneg %p1436_p9 }
  0x35   : > { %479 = vmatprep.mubr.bf16.mxu0 %v1501_v0 }
  0xa1   : > { %v335_v15 = vpop.permute.xlu0 %334 }
  0xf4   : > { %v375_v16 = vpop.f32.mrf.mxu0 }
  0xf5   : > { %v376_v17 = vadd.f32 %v375_v16, %v335_v15  ;;  %v633_v16 = vrot.slane %v1309_v59, %v1701_v33 }
  0xf6   : > { %v377_v18 = vpop.f32.mrf.mxu0 }
  0xf7   : > { %v1660_v19 = vmax.f32 %v376_v17, 0.0  ;;  %v378_v20 = vadd.f32 %v377_v18, %v335_v15  ;;  %v1316_v17 = vld [vmem:[%s1932_s7 + $0xa] sm:$0x3]  ;;  %v407_v18 = vld [vmem:[%s1928_s3] sm:$0xf] }
  0xf8   : > { %v379_v21 = vpop.f32.mrf.mxu0 }
  0xf9   : > { %v1662_v22 = vmax.f32 %v378_v20, 0.0  ;;  %410 = vrot.lane.b32.xlu0 %v1660_v19, %s1502_s17 }
  0xfa   : > { %v380_v23 = vpop.f32.mrf.mxu0 }
  0xfb   : > { %412 = vrot.lane.b32.xlu1 %v1662_v22, %s1502_s17 }
  0xfd   : > { %386 = vrot.lane.b32.xlu0 %v1662_v22, %s1503_s18 }
  0xff   : > { %384 = vrot.lane.b32.xlu1 %v1660_v19, %s1503_s18 }
 0x101   : > { %540 = vrot.lane.b32.xlu0 %v1662_v22, %s1504_s19 }
 0x103   : > { %538 = vrot.lane.b32.xlu1 %v1660_v19, %s1504_s19 }
 0x105   : > { %618 = vrot.lane.b32.xlu0 %v1662_v22, %s1505_s20 }
 0x107   : > { %616 = vrot.lane.b32.xlu1 %v1660_v19, %s1505_s20  ;;  %s1879_s20 = scalar_lea.hbm %s1933_s8, %s1343_s13 }
 0x109   : > { %752 = vrot.lane.b32.xlu0 %v1662_v22, %s1506_s21 }
 0x10b   : > { %750 = vrot.lane.b32.xlu1 %v1660_v19, %s1506_s21  ;;  %s1884_s21 = scalar_lea.sflag [#allocation4], %s309_s25 }
 0x10d   : > { %830 = vrot.lane.b32.xlu0 %v1662_v22, %s1507_s22 }
 0x10f   : > { %828 = vrot.lane.b32.xlu1 %v1660_v19, %s1507_s22  ;;  %s1510_s22 = smov [#allocation5]  }
 0x111   : > { %908 = vrot.lane.b32.xlu0 %v1662_v22, %s1508_s23 }
 0x113   : > { %906 = vrot.lane.b32.xlu1 %v1660_v19, %s1508_s23  ;;  %s1438_s23 = sshll.u32 %s1510_s22, 4  ;;  %s1439_s23 = int_to_ptr.vmem [resolvable:$false] %s1438_s23 }
 0x114   : > { %p1441_p11 = scmp.lt.s32.totalorder %s1873_s12, %s1439_s23 }
 0x115   : > { %986 = vrot.lane.b32.xlu0 %v1662_v22, %s1509_s24 }
 0x117   : > { %984 = vrot.lane.b32.xlu1 %v1660_v19, %s1509_s24  ;;  %s1440_s24 = scalar_lea.vmem %s1439_s23, 2048 }
 0x118   : > { %p1442_p12 = scmp.lt.s32.totalorder %s1440_s24, %s1434_s9 }
 0x119   : > { %1084 = vperm.xlu0 %1404, %v1078_v24   ;;  %v697_v24 = vpack.c.bf16 %v1662_v22, %v1662_v22 }
 0x11a   : > { %p1443_p13 = por %p1442_p12, %p1441_p11 }
 0x11b   : > { %1065 = vperm.xlu1 %1405, %v1062_v25   ;;  %v696_v25 = vpack.c.bf16 %v1660_v19, %v1660_v19  ;;  %v767_v19 = vrot.slane %v1316_v17, %v1701_v33 }
 0x11c   : > { %p1444_p0 = pnand %p1443_p13, %p1437_p10 }
 0x11d   : > { %1094 = vperm.xlu0 %1404, %v1080_v26  }
 0x11f   : > { %1089 = vperm.xlu1 %1405, %v1079_v27  }
 0x123   : > { %1099 = vperm.xlu1 %1405, %v1081_v28   ;;  %v763_v28 = vrot.slane %v1316_v17, %v1699_v32 }
 0x16b   : > { %v411_v35 = vpop.permute.xlu0 %410 }
 0x16d   : > { %v413_v39 = vpop.permute.xlu1 %412 }
 0x16e   : > { %v415_v40 = vsel %vm414_vm1, %v411_v35, %v413_v39  ;;  %v416_v41 = vsel %vm414_vm1, %v413_v39, %v411_v35  ;;  %v1320_v35 = vld [vmem:[%s1932_s7 + $0xc] sm:$0x3] }
 0x16f   : > { %v430_v42 = vmul.f32 %v423_v36, %v416_v41  ;;  %v431_v43 = vmul.f32 %v427_v37, %v415_v40  ;;  %v387_v44 = vpop.permute.xlu0 %386  ;;  %v1306_v36 = vld [vmem:[%s1928_s3 + $0x8] sm:$0xf]  ;;  %v702_v40 = vsel %vm440_vm3, %v696_v25, 0 }
 0x171   : > { %v434_v48 = vpack.c.bf16 %v430_v42, %v430_v42  ;;  %v435_v49 = vpack.c.bf16 %v431_v43, %v431_v43  ;;  %v385_v50 = vpop.permute.xlu1 %384  ;;  %v841_v43 = vrot.slane %v1320_v35, %v1699_v32 }
 0x172   : > { %v391_v51 = vsel %vm390_vm2, %v385_v50, %v387_v44  ;;  %v392_v52 = vsel %vm390_vm2, %v387_v44, %v385_v50  ;;  %v1310_v50 = vld [vmem:[%s1928_s3 + $0xc] sm:$0xf] }
 0x173   : > { %v405_v54 = vmul.f32 %v398_v45, %v392_v52  ;;  %1301 = vmatprep.subr.msk.bf16.mxu0 %vm440_vm3, %v435_v49  ;;  %v541_v55 = vpop.permute.xlu0 %540  ;;  %v442_v56 = vsel %vm440_vm3, %v434_v48, 0  ;;  %v406_v58 = vmul.f32 %v402_v47, %v391_v51  ;;  %v845_v48 = vrot.slane %v1320_v35, %v1701_v33  ;;  %v1324_v49 = vld [vmem:[%s1932_s7 + $0xe] sm:$0x3] }
 0x174   : > { %462 = vmatpush1.bf16.msra.mxu0 %v442_v56  ;;  %v919_v56 = vrot.slane %v1324_v49, %v1699_v32 }
 0x175   : > { %v539_v61 = vpop.permute.xlu1 %538  ;;  %v409_v62 = vpack.c.bf16 %v406_v58, %v406_v58  ;;  %v408_v63 = vpack.c.bf16 %v405_v54, %v405_v54 }
 0x176   : > { %v543_v4 = vsel %vm542_vm4, %v539_v61, %v541_v55  ;;  %v544_v8 = vsel %vm542_vm4, %v541_v55, %v539_v61  ;;  %v923_v61 = vrot.slane %v1324_v49, %v1701_v33 }
 0x177   : > { %v558_v12 = vmul.f32 %v551_v53, %v544_v8  ;;  %v559_v13 = vmul.f32 %v555_v57, %v543_v4  ;;  %1302 = vmatmul.mubr.msk.bf16.vlgmr.msra.gmra.mxu0 %vm436_vm5, %v1300_v60  ;;  %1303 = vmatprep.subr.msk.bf16.mxu1 %vm440_vm3, %v409_v62  ;;  %v619_v14 = vpop.permute.xlu0 %618  ;;  %v492_v15 = vsel %vm440_vm3, %v408_v63, 0  ;;  %v1328_v62 = vld [vmem:[%s1932_s7 + $0x10] sm:$0x3] }
 0x178   : > { %512 = vmatpush1.bf16.msra.mxu1 %v492_v15  ;;  %605 = vmatprep.mubr.bf16.mxu0 %v1501_v0  ;;  %v1313_v63 = vld [vmem:[%s1928_s3 + $0x10] sm:$0xf] }
 0x179   : > { %v562_v20 = vpack.c.bf16 %v558_v12, %v558_v12  ;;  %v563_v21 = vpack.c.bf16 %v559_v13, %v559_v13  ;;  %v617_v23 = vpop.permute.xlu1 %616 }
 0x17a   : > { %v621_v26 = vsel %vm620_vm6, %v617_v23, %v619_v14  ;;  %v622_v27 = vsel %vm620_vm6, %v619_v14, %v617_v23  ;;  %v997_v14 = vrot.slane %v1328_v62, %v1699_v32 }
 0x17b   : > { %v636_v29 = vmul.f32 %v629_v9, %v622_v27  ;;  %v637_v30 = vmul.f32 %v633_v16, %v621_v26  ;;  %1304 = vmatmul.mubr.msk.bf16.vlgmr.msra.gmra.mxu1 %vm436_vm5, %v407_v18  ;;  %1307 = vmatprep.subr.msk.bf16.mxu0 %vm440_vm3, %v563_v21  ;;  %v753_v22 = vpop.permute.xlu0 %752  ;;  %v568_v34 = vsel %vm440_vm3, %v562_v20, 0  ;;  %v1001_v18 = vrot.slane %v1328_v62, %v1701_v33  ;;  %v1317_v20 = vld [vmem:[%s1928_s3 + $0x14] sm:$0xf] }
 0x17c   : > { %588 = vmatpush1.bf16.msra.mxu0 %v568_v34  ;;  %683 = vmatprep.mubr.bf16.mxu1 %v1501_v0  ;;  %v1325_v34 = vld [vmem:[%s1928_s3 + $0x1c] sm:$0xf] }
 0x17d   : > { %v640_v37 = vpack.c.bf16 %v636_v29, %v636_v29  ;;  %v641_v38 = vpack.c.bf16 %v637_v30, %v637_v30  ;;  %v751_v39 = vpop.permute.xlu1 %750  ;;  %1314 = vmatprep.subr.msk.bf16.mxu0 %vm440_vm3, %v697_v24  ;;  %v1321_v29 = vld [vmem:[%s1928_s3 + $0x18] sm:$0xf] }
 0x17e   : > { %v755_v41 = vsel %vm754_vm7, %v751_v39, %v753_v22  ;;  %v756_v42 = vsel %vm754_vm7, %v753_v22, %v751_v39 }
 0x17f   : > { %v770_v44 = vmul.f32 %v763_v28, %v755_v41  ;;  %v771_v45 = vmul.f32 %v767_v19, %v756_v42  ;;  %1308 = vmatmul.mubr.msk.bf16.vlgmr.msra.gmra.mxu0 %vm436_vm5, %v1306_v36  ;;  %1311 = vmatprep.subr.msk.bf16.mxu1 %vm440_vm3, %v641_v38  ;;  %v831_v46 = vpop.permute.xlu0 %830  ;;  %v646_v47 = vsel %vm440_vm3, %v640_v37, 0  ;;  %v1329_v19 = vld [vmem:[%s1928_s3 + $0x20] sm:$0xf] }
 0x180   : > { %666 = vmatpush1.bf16.msra.mxu1 %v646_v47  ;;  %722 = vmatpush1.bf16.msra.mxu0 %v702_v40 }
 0x181   : > { %v774_v51 = vpack.c.bf16 %v770_v44, %v770_v44  ;;  %v775_v52 = vpack.c.bf16 %v771_v45, %v771_v45  ;;  %v829_v53 = vpop.permute.xlu1 %828  ;;  %739 = vmatprep.mubr.bf16.mxu0 %v1501_v0 }
 0x182   : > { %v833_v54 = vsel %vm832_vm8, %v829_v53, %v831_v46  ;;  %v834_v55 = vsel %vm832_vm8, %v831_v46, %v829_v53 }
 0x183   : > { %v848_v57 = vmul.f32 %v841_v43, %v833_v54  ;;  %v849_v58 = vmul.f32 %v845_v48, %v834_v55  ;;  %1312 = vmatmul.mubr.msk.bf16.vlgmr.msra.gmra.mxu1 %vm436_vm5, %v1310_v50  ;;  %1318 = vmatprep.subr.msk.bf16.mxu1 %vm440_vm3, %v775_v52  ;;  %v909_v59 = vpop.permute.xlu0 %908  ;;  %v780_v60 = vsel %vm440_vm3, %v774_v51, 0 }
 0x184   : > { %800 = vmatpush1.bf16.msra.mxu1 %v780_v60  ;;  %817 = vmatprep.mubr.bf16.mxu1 %v1501_v0 }
 0x185   : > { %v852_v4 = vpack.c.bf16 %v848_v57, %v848_v57  ;;  %v853_v8 = vpack.c.bf16 %v849_v58, %v849_v58  ;;  %v907_v9 = vpop.permute.xlu1 %906 }
 0x186   : > { %v911_v12 = vsel %vm910_vm9, %v907_v9, %v909_v59  ;;  %v912_v13 = vsel %vm910_vm9, %v909_v59, %v907_v9 }
 0x187   : > { %v926_v15 = vmul.f32 %v919_v56, %v911_v12  ;;  %v927_v16 = vmul.f32 %v923_v61, %v912_v13  ;;  %1315 = vmatmul.mubr.msk.bf16.vlgmr.msra.gmra.mxu0 %vm436_vm5, %v1313_v63  ;;  %1322 = vmatprep.subr.msk.bf16.mxu0 %vm440_vm3, %v853_v8  ;;  %v858_v17 = vsel %vm440_vm3, %v852_v4, 0  ;;  %v987_v32 = vpop.permute.xlu0 %986 }
 0x188   : > { %878 = vmatpush1.bf16.msra.mxu0 %v858_v17  ;;  %895 = vmatprep.mubr.bf16.mxu0 %v1501_v0 }
 0x189   : > { %v930_v21 = vpack.c.bf16 %v926_v15, %v926_v15  ;;  %v931_v23 = vpack.c.bf16 %v927_v16, %v927_v16  ;;  %v985_v24 = vpop.permute.xlu1 %984 }
 0x18a   : > { %v989_v25 = vsel %vm988_vm10, %v985_v24, %v987_v32  ;;  %v990_v26 = vsel %vm988_vm10, %v987_v32, %v985_v24 }
 0x18b   : > { %v1004_v27 = vmul.f32 %v997_v14, %v989_v25  ;;  %v1005_v28 = vmul.f32 %v1001_v18, %v990_v26  ;;  %1319 = vmatmul.mubr.msk.bf16.vlgmr.msra.gmra.mxu1 %vm436_vm5, %v1317_v20  ;;  %1326 = vmatprep.subr.msk.bf16.mxu1 %vm440_vm3, %v931_v23  ;;  %v936_v33 = vsel %vm440_vm3, %v930_v21, 0 }
 0x18c   : > { %956 = vmatpush1.bf16.msra.mxu1 %v936_v33  ;;  %973 = vmatprep.mubr.bf16.mxu1 %v1501_v0 }
 0x18d   : > { %v1008_v30 = vpack.c.bf16 %v1004_v27, %v1004_v27  ;;  %v1009_v22 = vpack.c.bf16 %v1005_v28, %v1005_v28 }
 0x18f   : > { %1323 = vmatmul.mubr.msk.bf16.vlgmr.msra.gmra.mxu0 %vm436_vm5, %v1321_v29  ;;  %1330 = vmatprep.subr.msk.bf16.mxu0 %vm440_vm3, %v1009_v22  ;;  %v1014_v31 = vsel %vm440_vm3, %v1008_v30, 0 }
 0x190   : > { %1034 = vmatpush1.bf16.msra.mxu0 %v1014_v31  ;;  %1051 = vmatprep.mubr.bf16.mxu0 %v1501_v0 }
 0x193   : > { %1327 = vmatmul.mubr.msk.bf16.vlgmr.msra.gmra.mxu1 %vm436_vm5, %v1325_v34 }
 0x194   : > { %1156 = vmatprep.mubr.bf16.mxu1 %v1501_v0 }
 0x196   : > { %v1066_v26 = vpop.permute.xlu1 %1065 }
 0x197   : > { %1331 = vmatmul.mubr.msk.bf16.vlgmr.msra.gmra.mxu0 %vm436_vm5, %v1329_v19 }
 0x237   : > { %v481_v35 = vpop.f32.mrf.mxu0 }
 0x239   : > { %v483_v36 = vpop.f32.mrf.mxu0 }
 0x23b   : > { %v485_v37 = vpop.f32.mrf.mxu0  ;;  %v531_v38 = vpop.f32.mrf.mxu1 }
 0x23c   : > { %v532_v53 = vadd.f32 %v531_v38, %v481_v35 }
 0x23d   : > { %v486_v39 = vpop.f32.mrf.mxu0  ;;  %v533_v40 = vpop.f32.mrf.mxu1 }
 0x23e   : > { %v534_v56 = vadd.f32 %v533_v40, %v483_v36  ;;  %v1406_v40 = vld [vmem:[%s1930_s5] sm:$0xff]  }
 0x23f   : > { %v535_v41 = vpop.f32.mrf.mxu1  ;;  %v607_v42 = vpop.f32.mrf.mxu0 }
 0x240   : > { %v614_v57 = vadd.f32 %v607_v42, %v532_v53  ;;  %v1407_v41 = vld [vmem:[%s1930_s5 + $0x8] sm:$0xff]   ;;  %v1085_v42 = vpop.permute.xlu0 %1084 }
 0x241   : > { %v536_v43 = vpop.f32.mrf.mxu1  ;;  %v609_v44 = vpop.f32.mrf.mxu0 }
 0x242   : > { %v615_v60 = vadd.f32 %v609_v44, %v534_v56 }
 0x243   : > { %v611_v45 = vpop.f32.mrf.mxu0  ;;  %v685_v46 = vpop.f32.mrf.mxu1 }
 0x244   : > { %v692_v61 = vadd.f32 %v685_v46, %v614_v57 }
 0x245   : > { %v612_v47 = vpop.f32.mrf.mxu0  ;;  %v687_v48 = vpop.f32.mrf.mxu1 }
 0x246   : > { %v693_v4 = vadd.f32 %v687_v48, %v615_v60  ;;  %v1090_v48 = vpop.permute.xlu1 %1089 }
 0x247   : > { %v689_v49 = vpop.f32.mrf.mxu1  ;;  %v741_v50 = vpop.f32.mrf.mxu0 }
 0x248   : > { %v748_v8 = vadd.f32 %v741_v50, %v692_v61 }
 0x249   : > { %v690_v51 = vpop.f32.mrf.mxu1  ;;  %v743_v52 = vpop.f32.mrf.mxu0 }
 0x24a   : > { %v749_v13 = vadd.f32 %v743_v52, %v693_v4 }
 0x24b   : > { %v745_v54 = vpop.f32.mrf.mxu0  ;;  %v819_v55 = vpop.f32.mrf.mxu1 }
 0x24c   : > { %v826_v14 = vadd.f32 %v819_v55, %v748_v8 }
 0x24d   : > { %v746_v58 = vpop.f32.mrf.mxu0  ;;  %v821_v59 = vpop.f32.mrf.mxu1 }
 0x24e   : > { %v827_v17 = vadd.f32 %v821_v59, %v749_v13 }
 0x24f   : > { %v823_v62 = vpop.f32.mrf.mxu1  ;;  %v897_v63 = vpop.f32.mrf.mxu0 }
 0x250   : > { %v904_v18 = vadd.f32 %v897_v63, %v826_v14  ;;  %v1100_v63 = vpop.permute.xlu1 %1099 }
 0x251   : > { %v824_v9 = vpop.f32.mrf.mxu1  ;;  %v899_v12 = vpop.f32.mrf.mxu0 }
 0x252   : > { %v905_v23 = vadd.f32 %v899_v12, %v827_v17 }
 0x253   : > { %v901_v15 = vpop.f32.mrf.mxu0  ;;  %v975_v16 = vpop.f32.mrf.mxu1 }
 0x254   : > { %v982_v32 = vadd.f32 %v975_v16, %v904_v18 }
 0x255   : > { %v902_v20 = vpop.f32.mrf.mxu0  ;;  %v977_v21 = vpop.f32.mrf.mxu1 }
 0x256   : > { %v983_v27 = vadd.f32 %v977_v21, %v905_v23 }
 0x257   : > { %v979_v24 = vpop.f32.mrf.mxu1  ;;  %v1053_v25 = vpop.f32.mrf.mxu0 }
 0x258   : > { %v1060_v28 = vadd.f32 %v1053_v25, %v982_v32 }
 0x259   : > { %v980_v33 = vpop.f32.mrf.mxu1  ;;  %v1055_v29 = vpop.f32.mrf.mxu0 }
 0x25a   : > { %v1068_v30 = vadd.f32 %v1066_v26, %v1060_v28  ;;  %v1061_v22 = vadd.f32 %v1055_v29, %v983_v27 }
 0x25b   : > { %v1057_v31 = vpop.f32.mrf.mxu0 }
 0x25c   : > { %v1070_v34 = vmax.f32 %v1068_v30, 0.0  ;;  %v1069_v19 = vadd.f32 %v1066_v26, %v1061_v22 }
 0x25d   : > { %v1058_v35 = vpop.f32.mrf.mxu0 }
 0x25e   : > { %v1076_v36 = vpack.c.bf16 %v1070_v34, %v1070_v34  ;;  %v1071_v37 = vmax.f32 %v1069_v19, 0.0 }
 0x260   : > { %v1077_v38 = vpack.c.bf16 %v1071_v37, %v1071_v37  ;;  %v1119_v39 = vsel %vm440_vm3, %v1076_v36, 0 }
 0x262   : > { %1334 = vmatprep.subr.msk.bf16.mxu1 %vm440_vm3, %v1077_v38 }
 0x263   : > { %1139 = vmatpush1.bf16.msra.mxu1 %v1119_v39 }
 0x266   : > { %1335 = vmatmul.mubr.msk.bf16.vlgmr.msra.gmra.mxu1 %vm436_vm5, %v1406_v40 }
 0x267   : > { %1166 = vmatprep.mubr.bf16.mxu1 %v1501_v0 }
 0x26e   : > { %1336 = vmatmul.mubr.msk.bf16.gmra.mxu1 %vm436_vm5, %v1407_v41 }
 0x326   : > { %v1158_v43 = vpop.f32.mrf.mxu1 }
 0x327   : > { %v1159_v44 = vadd.f32 %v1158_v43, %v1085_v42 }
 0x328   : > { %v1160_v45 = vpop.f32.mrf.mxu1 }
 0x329   : > { %v1177_v46 = vadd.f32 %v1159_v44, %v1650_v10  ;;  %v1161_v47 = vadd.f32 %v1160_v45, %v1085_v42  ;;  %v1095_v10 = vpop.permute.xlu0 %1094 }
 0x32a   : > { %v1162_v49 = vpop.f32.mrf.mxu1 }
 0x32b   : > { %v1185_v50 = vmax.f32 %v1177_v46, 0.0  ;;  %v1178_v0 = vadd.f32 %v1161_v47, %v1642_v6  ;;  %v1163_v51 = vadd.f32 %v1162_v49, %v1090_v48 }
 0x32c   : > { %v1164_v52 = vpop.f32.mrf.mxu1 }
 0x32d   : > { %1193 = vst [vmem:[%s1857_s10] sm:$0xff] %v1185_v50  ;;  %v1186_v53 = vmax.f32 %v1178_v0, 0.0  ;;  %v1179_v54 = vadd.f32 %v1163_v51, %v1652_v11  ;;  %v1165_v55 = vadd.f32 %v1164_v52, %v1090_v48 }
 0x32e   : > { %v1168_v56 = vpop.f32.mrf.mxu1 }
 0x32f   : > { %1194 = vst [vmem:[%s1857_s10 + $0x8] sm:$0xff] %v1186_v53  ;;  %v1187_v57 = vmax.f32 %v1179_v54, 0.0  ;;  %v1180_v6 = vadd.f32 %v1165_v55, %v1644_v7  ;;  %v1169_v58 = vadd.f32 %v1168_v56, %v1095_v10 }
 0x330   : > { %v1170_v59 = vpop.f32.mrf.mxu1 }
 0x331   : > { %1195 = vst [vmem:[%s1857_s10 + $0x10] sm:$0xff] %v1187_v57  ;;  %v1188_v60 = vmax.f32 %v1180_v6, 0.0  ;;  %v1181_v61 = vadd.f32 %v1169_v58, %v1636_v3  ;;  %v1171_v62 = vadd.f32 %v1170_v59, %v1095_v10 }
 0x332   : > { %v1172_v11 = vpop.f32.mrf.mxu1 }
 0x333   : > { %1196 = vst [vmem:[%s1857_s10 + $0x18] sm:$0xff] %v1188_v60  ;;  %v1189_v4 = vmax.f32 %v1181_v61, 0.0  ;;  %v1182_v8 = vadd.f32 %v1171_v62, %v1632_v1  ;;  %v1173_v9 = vadd.f32 %v1172_v11, %v1100_v63 }
 0x334   : > { %v1174_v7 = vpop.f32.mrf.mxu1 }
 0x335   : > { %1197 = vst [vmem:[%s1857_s10 + $0x20] sm:$0xff] %v1189_v4  ;;  %v1190_v12 = vmax.f32 %v1182_v8, 0.0  ;;  %v1183_v13 = vadd.f32 %v1173_v9, %v1640_v5  ;;  %v1175_v14 = vadd.f32 %v1174_v7, %v1100_v63 }
 0x337   : > { %1198 = vst [vmem:[%s1857_s10 + $0x28] sm:$0xff] %v1190_v12  ;;  %v1191_v3 = vmax.f32 %v1183_v13, 0.0  ;;  %v1184_v15 = vadd.f32 %v1175_v14, %v1634_v2 }
 0x339   : > { %1199 = vst [vmem:[%s1857_s10 + $0x30] sm:$0xff] %v1191_v3  ;;  %v1192_v1 = vmax.f32 %v1184_v15, 0.0 }
 0x33b   : > { %1200 = vst [vmem:[%s1857_s10 + $0x38] sm:$0xff] %v1192_v1 }
 0x33c   : > { %1447 = shalt.err (!%p1444_p0)
}
 0x33d   : > { %s1448_s25 = scalar_lea.hbm %s1879_s20, 1024  ;;  %s1452_s13 = scalar_lea.hbm %s1933_s8, 2048 }
 0x33e   : > { %p1449_p1 = scmp.ne.s32.totalorder %s1879_s20, %s1448_s25  ;;  %p1453_p4 = scmp.lt.s32.totalorder %s1879_s20, %s1933_s8 }
 0x33f   : > { %p1454_p7 = scmp.lt.s32.totalorder %s1452_s13, %s1448_s25 }
 0x340   : > { %p1450_p2 = pnand %p1449_p1, %p1595_p5 }
 0x341   : > { %p1455_p8 = por %p1454_p7, %p1453_p4 }
 0x342   : > { %p1451_p3 = pneg %p1450_p2 }
 0x344   : > { %p1456_p6 = pnand %p1455_p8, %p1451_p3 }
 0x346   : > { %1459 = shalt.err (!%p1456_p6)
}
 0x347   : > { %s1511_s9 = smov 256  }
 0x348   : > { %1348 = dma.vmem_to_hbm [thread:$0]  (%p1595_p5), %s1873_s12, 1024, %s1879_s20, %s1884_s21, %s1511_s9, %s1511_s9, %s1502_s17  }
 0x349 PF: > { %p1360_p9 = scmp.ge.s32.totalorder %s1498_s30, 2  ;;  %s1230_s22 = sand.u32 1, %s1486_s27  }
 0x34a   : > { %p1937_p10 = scmp.ne.s32.totalorder %s1935_s16, 0  ;;  %s1231_s23 = scalar_lea.sflag [#allocation4], %s1230_s22 }
 0x34c   : > { %p1355_p11 = pnand %p1360_p9, %p1937_p10 }
 0x34e   : > { %p1356_p12 = pneg %p1355_p11 }
 0x350   : > { %1481 = dma.done.wait (%p1356_p12), %s1231_s23, 1024  }
 0x351   : > { %1483 = vsyncadd (%p1356_p12), %s1231_s23, 4294966272  ;;  %p19_p13 = scmp.ge.s32.totalorder %s1582_s11, 4   ;;  %s1938_s27 = smov %s1490_s28 }
 0x352   : > { %s1939_s28 = smov %s1494_s29  ;;  %s1940_s29 = smov %s1593_s14 }
 0x353   : > { %s1941_s30 = smov %s1582_s11  ;;  %21 = sbr.rel (!%p19_p13) target bundleno = 4 (0x4), region = 107 }
 0x358   :  { %1236 = vsyncpa [#allocation3], 1 }
 0x359   :  { %1238 = vsyncpa [#allocation3 + $0x1], 1 }
 0x35a   :  { %1239 = vsyncpa [#allocation4], 1 }
 0x35b   :  { %1241 = vsyncpa [#allocation4 + $0x1], 1 }

</bundles_post_ra>
